<compile_context>
chip_gen: v7x
topology: tpu7x:2x2x1
jax: 0.10.0
libtpu: 0.0.40
codegen_flags: <defaults>
</compile_context>

<pallas_src>
import jax
import jax.numpy as jnp
import numpy as np
from jax.experimental import pallas as pl
from jax.experimental.pallas import tpu as pltpu


# --------------------------------------------------------------------------- helpers

def _round_up(x, m):
    return (x + m - 1) // m * m


def _pick_tile(padded_dim, candidates=(512, 256, 128)):
    """Largest tile from `candidates` dividing `padded_dim` (a multiple of 128).
    512-sized tiles still fit comfortably in v7x's 64 MiB VMEM with double buffering."""
    for t in candidates:
        if padded_dim % t == 0:
            return t
    return padded_dim


_VMEM_LIMIT = 32 * 1024 * 1024  # explicit scoped-VMEM limit, safe on v5e/v6e/v7x


# --------------------------------------------------------------------------- kernels

def _dual_matmul_kernel(a_bd_ref, a_ne_ref, x_ref, o_ref, acc_bd, acc_ne):
    """Per grid step: acc_bd += A_bd_tile @ X_tile ; acc_ne += A_ne_tile @ X_tile.
    The RHS tile X is loaded once and shared by both adjacency matmuls."""
    k = pl.program_id(3)

    @pl.when(k == 0)
    def _():
        acc_bd[...] = jnp.zeros_like(acc_bd)
        acc_ne[...] = jnp.zeros_like(acc_ne)

    x = x_ref[0]  # (tk, tn) bf16, shared RHS tile
    acc_bd[...] += jnp.dot(a_bd_ref[...], x, preferred_element_type=jnp.float32)
    acc_ne[...] += jnp.dot(a_ne_ref[...], x, preferred_element_type=jnp.float32)

    @pl.when(k == pl.num_programs(3) - 1)
    def _():
        o_ref[0, 0] = acc_bd[...].astype(o_ref.dtype)
        o_ref[1, 0] = acc_ne[...].astype(o_ref.dtype)


def dual_propagate(adj_bd, adj_ne, x_chunks):
    """Y[0, c] = adj_bd @ X[c] ; Y[1, c] = adj_ne @ X[c]   (all lane/row padded, bf16).

    adj_bd, adj_ne : (Np, Np) bf16
    x_chunks       : (C, Np, dp) bf16   ->   (2, C, Np, dp) bf16
    """
    C, Np, dp = x_chunks.shape
    assert adj_bd.shape == (Np, Np) and adj_ne.shape == (Np, Np)
    tm = _pick_tile(Np)
    tk = _pick_tile(Np)
    tn = _pick_tile(dp)
    grid = (C, Np // tm, dp // tn, Np // tk)

    return pl.pallas_call(
        _dual_matmul_kernel,
        out_shape=jax.ShapeDtypeStruct((2, C, Np, dp), jnp.bfloat16),
        grid_spec=pltpu.PrefetchScalarGridSpec(
            num_scalar_prefetch=0,
            grid=grid,
            in_specs=[
                pl.BlockSpec((tm, tk), lambda c, i, j, k: (i, k)),
                pl.BlockSpec((tm, tk), lambda c, i, j, k: (i, k)),
                pl.BlockSpec((1, tk, tn), lambda c, i, j, k: (c, k, j)),
            ],
            out_specs=pl.BlockSpec((2, 1, tm, tn), lambda c, i, j, k: (0, c, i, j)),
            scratch_shapes=[pltpu.VMEM((tm, tn), jnp.float32),
                            pltpu.VMEM((tm, tn), jnp.float32)],
        ),
        compiler_params=pltpu.CompilerParams(
            dimension_semantics=("parallel", "parallel", "parallel", "arbitrary"),
            vmem_limit_bytes=_VMEM_LIMIT,
        ),
    )(adj_bd, adj_ne, x_chunks)


def _make_proj_kernel(n_proj_layers):
    """Fused stack of n Linear+ReLU layers; intermediates never leave VMEM/vregs."""
    def kernel(x_ref, *refs):
        o_ref = refs[-1]
        h = x_ref[...]                                   # bf16 (te, F0p)
        for l in range(n_proj_layers):
            w = refs[2 * l][...]                         # bf16
            b = refs[2 * l + 1][...]                     # f32 (1, Fp)
            y = jnp.dot(h, w, preferred_element_type=jnp.float32) + b
            h = jnp.maximum(y, 0.0).astype(jnp.bfloat16)
        o_ref[...] = h
    return kernel


def pallas_projection(ge, proj_params):
    """projection_network_edges: fused (Linear, ReLU)* in ONE pallas_call.
    Returns (E_pad, dp) bf16 with exact zeros in padded feature columns."""
    E, F0 = ge.shape
    dims = [F0] + [w.shape[1] for (w, _) in proj_params]
    dims_p = [_round_up(d, 128) for d in dims]
    if E > 512:
        E_pad, te = _round_up(E, 256), 256
    else:
        E_pad = _round_up(E, 16)
        te = E_pad

    x = jnp.zeros((E_pad, dims_p[0]), jnp.float32).at[:E, :F0].set(ge.astype(jnp.float32))
    x = x.astype(jnp.bfloat16)

    flat_wb = []
    in_specs = [pl.BlockSpec((te, dims_p[0]), lambda e: (e, 0))]
    for l, (w, b) in enumerate(proj_params):
        wp = jnp.zeros((dims_p[l], dims_p[l + 1]), jnp.float32)
        wp = wp.at[:dims[l], :dims[l + 1]].set(w.astype(jnp.float32)).astype(jnp.bfloat16)
        bp = jnp.zeros((1, dims_p[l + 1]), jnp.float32)
        bp = bp.at[:, :dims[l + 1]].set(b.reshape(1, -1).astype(jnp.float32))
        flat_wb += [wp, bp]
        in_specs.append(pl.BlockSpec((dims_p[l], dims_p[l + 1]), lambda e: (0, 0)))
        in_specs.append(pl.BlockSpec((1, dims_p[l + 1]), lambda e: (0, 0)))

    out = pl.pallas_call(
        _make_proj_kernel(len(proj_params)),
        out_shape=jax.ShapeDtypeStruct((E_pad, dims_p[-1]), jnp.bfloat16),
        grid_spec=pltpu.PrefetchScalarGridSpec(
            num_scalar_prefetch=0,
            grid=(E_pad // te,),
            in_specs=in_specs,
            out_specs=pl.BlockSpec((te, dims_p[-1]), lambda e: (e, 0)),
        ),
        compiler_params=pltpu.CompilerParams(
            dimension_semantics=("parallel",),
            vmem_limit_bytes=_VMEM_LIMIT,
        ),
    )(x, *flat_wb)
    return out, dims_p[-1]


def _rowdot_gather_kernel(u_idx_ref, i_idx_ref, gu_ref, gi_ref, o_ref):
    """forward(): xui[b] = sum(gu[user[b]] * gi[item[b]]).
    Row gather is done by the BlockSpec index_maps via scalar prefetch."""
    prod = gu_ref[0].astype(jnp.float32) * gi_ref[0].astype(jnp.float32)   # (1, W)
    s = jnp.sum(prod, axis=1, keepdims=True)                               # (1, 1)
    o_ref[0] = jnp.broadcast_to(s, (1, 128))                               # lane-dense store


def pallas_forward(gu_flat, gi_flat, user_idx, item_idx):
    """LightEGCFModel.forward with the gather fused into the kernel."""
    B = user_idx.shape[0]
    U, W = gu_flat.shape
    I = gi_flat.shape[0]
    gu3 = gu_flat.reshape(U, 1, W)
    gi3 = gi_flat.reshape(I, 1, W)

    out = pl.pallas_call(
        _rowdot_gather_kernel,
        out_shape=jax.ShapeDtypeStruct((B, 1, 128), jnp.float32),
        grid_spec=pltpu.PrefetchScalarGridSpec(
            num_scalar_prefetch=2,                    # user_idx, item_idx -> SMEM
            grid=(B,),
            in_specs=[
                pl.BlockSpec((1, 1, W), lambda b, u, i: (u[b], 0, 0)),
                pl.BlockSpec((1, 1, W), lambda b, u, i: (i[b], 0, 0)),
            ],
            out_specs=pl.BlockSpec((1, 1, 128), lambda b, u, i: (b, 0, 0)),
        ),
        compiler_params=pltpu.CompilerParams(
            dimension_semantics=("arbitrary",),
            vmem_limit_bytes=_VMEM_LIMIT,
        ),
    )(user_idx.astype(jnp.int32), item_idx.astype(jnp.int32), gu3, gi3)
    return out[:, 0, 0]


# --------------------------------------------------------------------------- model glue

def build_norm_adj(edge_index, num_nodes):
    """Dense symmetric-normalized adjacency (gcn_norm, no self loops).
    NOTE: assumes the edge list is already symmetrized (both directions present)."""
    row, col = edge_index[0], edge_index[1]
    deg = jnp.zeros((num_nodes,), jnp.float32).at[col].add(1.0)
    dinv = jnp.where(deg > 0, 1.0 / jnp.sqrt(jnp.maximum(deg, 1e-12)), 0.0)
    norm = dinv[row] * dinv[col]
    adj = jnp.zeros((num_nodes, num_nodes), jnp.float32).at[col, row].add(norm)
    return adj


def propagate_embeddings(params, adj_nn, adj_ee, adj_ne, num_users, num_items, n_layers):
    """LightEGCFModel.propagate_embeddings.

    Embeddings are kept as lane-dense chunks (C, Np, dp): rows [0:n_nodes] are the
    node-node embeddings, rows [n_nodes:N] the edge-edge embeddings, columns are the
    per-layer concatenation groups.  The torch per-layer cat(...) is therefore a free
    leading-axis reshape of the fused dual-matmul output.
    """
    Gu, Gi, Ge, proj = params["Gu"], params["Gi"], params["Ge"], params["proj"]
    embed_k = Gu.shape[1]
    n_nodes = num_users + num_items
    n_edges = Ge.shape[0]
    N = n_nodes + n_edges
    dp = _round_up(embed_k, 128)
    Np = _round_up(N, 128)

    # projection network (one fused pallas_call)
    proj_out, dp_proj = pallas_projection(Ge, proj)
    assert dp_proj == dp, "last projection layer must produce embed_k features"

    # initial stacked buffer (padded rows/cols are exact zeros)
    stacked = jnp.zeros((Np, dp), jnp.float32)
    stacked = stacked.at[:num_users, :embed_k].set(Gu.astype(jnp.float32))
    stacked = stacked.at[num_users:n_nodes, :embed_k].set(Gi.astype(jnp.float32))
    stacked = stacked.at[n_nodes:N, :].set(proj_out[:n_edges].astype(jnp.float32))

    # padded bf16 adjacencies: block_diag(adj_nn, adj_ee) and adj_ne
    adj_bd = jnp.zeros((Np, Np), jnp.float32)
    adj_bd = adj_bd.at[:n_nodes, :n_nodes].set(adj_nn)
    adj_bd = adj_bd.at[n_nodes:N, n_nodes:N].set(adj_ee)
    adj_bd = adj_bd.astype(jnp.bfloat16)
    adj_ne_p = jnp.zeros((Np, Np), jnp.float32).at[:N, :N].set(adj_ne).astype(jnp.bfloat16)

    chunks = stacked.astype(jnp.bfloat16)[None]          # (1, Np, dp)
    for _ in range(n_layers):
        y = dual_propagate(adj_bd, adj_ne_p, chunks)     # (2, C, Np, dp)
        chunks = y.reshape(-1, Np, dp)                   # free reshape == column concat

    Cf = chunks.shape[0]
    # lane-dense (padded) layout used by the forward kernel (pad cols are zero)
    gu_flat = jnp.transpose(chunks[:, :num_users], (1, 0, 2)).reshape(num_users, Cf * dp)
    gi_flat = jnp.transpose(chunks[:, num_users:n_nodes], (1, 0, 2)).reshape(num_items, Cf * dp)
    # standard (unpadded) layout, matching the torch column order, for checking
    gu_std = jnp.transpose(chunks[:, :num_users, :embed_k], (1, 0, 2)).reshape(num_users, Cf * embed_k)
    gi_std = jnp.transpose(chunks[:, num_users:n_nodes, :embed_k], (1, 0, 2)).reshape(num_items, Cf * embed_k)
    return gu_flat, gi_flat, gu_std, gi_std


# --------------------------------------------------------------------------- reference

def reference_propagate_and_forward(params, adj_nn, adj_ee, adj_ne,
                                    num_users, num_items, n_layers,
                                    user_idx, item_idx):
    """Plain-JAX reference following the original concat-based torch structure,
    with the same numerics (bf16 MXU inputs, f32 accumulation, bf16 outputs)."""
    Gu, Gi, Ge, proj = params["Gu"], params["Gi"], params["Ge"], params["proj"]

    def mm(a, x):
        return jnp.dot(a.astype(jnp.bfloat16), x.astype(jnp.bfloat16),
                       preferred_element_type=jnp.float32).astype(jnp.bfloat16)

    node_node = jnp.concatenate([Gu, Gi], axis=0)
    edge_edge = Ge
    for (w, b) in proj:
        y = jnp.dot(edge_edge.astype(jnp.bfloat16), w.astype(jnp.bfloat16),
                    preferred_element_type=jnp.float32) + b.reshape(1, -1)
        edge_edge = jnp.maximum(y, 0.0).astype(jnp.bfloat16)
    node_edge = jnp.concatenate([node_node, edge_edge.astype(jnp.float32)], axis=0)

    n_nodes = num_users + num_items
    for _ in range(n_layers):
        node_node = mm(adj_nn, node_node)
        edge_edge = mm(adj_ee, edge_edge)
        node_edge = mm(adj_ne, node_edge)
        ne_node = node_edge[:n_nodes]
        ne_edge = node_edge[n_nodes:]
        node_node = jnp.concatenate([node_node, ne_node], axis=1)
        edge_edge = jnp.concatenate([edge_edge, ne_edge], axis=1)
        node_edge = jnp.concatenate([node_node, edge_edge], axis=0)

    gu = node_node[:num_users]
    gi = node_node[num_users:]
    gamma_u = gu[user_idx].astype(jnp.float32)
    gamma_i = gi[item_idx].astype(jnp.float32)
    xui = jnp.sum(gamma_u * gamma_i, axis=1)
    return gu, gi, xui


# --------------------------------------------------------------------------- main

if __name__ == "__main__":
    num_users = 8
    num_items = 8
    embed_k = 16
    n_layers = 2
    num_interactions = 12
    edge_feat_dim = 6
    weight_size_projection_edge = [24, embed_k]   # last layer must equal embed_k

    key = jax.random.PRNGKey(0)
    k_gu, k_gi, k_ge, k_w0, k_b0, k_w1, k_b1, k_u, k_i = jax.random.split(key, 9)

    def xavier_normal(k, shape):
        std = float(np.sqrt(2.0 / (shape[0] + shape[1])))
        return std * jax.random.normal(k, shape, jnp.float32)

    params = {
        "Gu": xavier_normal(k_gu, (num_users, embed_k)),
        "Gi": xavier_normal(k_gi, (num_items, embed_k)),
        "Ge": jax.random.normal(k_ge, (num_interactions, edge_feat_dim), jnp.float32),
        "proj": [
            (xavier_normal(k_w0, (edge_feat_dim, weight_size_projection_edge[0])),
             0.01 * jax.random.normal(k_b0, (1, weight_size_projection_edge[0]), jnp.float32)),
            (xavier_normal(k_w1, (weight_size_projection_edge[0], weight_size_projection_edge[1])),
             0.01 * jax.random.normal(k_b1, (1, weight_size_projection_edge[1]), jnp.float32)),
        ],
    }

    # deterministic synthetic graphs (all edge lists symmetrized)
    rng = np.random.RandomState(0)
    users = rng.randint(0, num_users, size=num_interactions)
    items = rng.randint(0, num_items, size=num_interactions) + num_users
    n_nodes = num_users + num_items

    ei = np.stack([np.concatenate([users, items]), np.concatenate([items, users])])
    edge_index = jnp.asarray(ei, jnp.int32)

    e_src = np.arange(num_interactions - 1)
    e_dst = e_src + 1
    eei = np.stack([np.concatenate([e_src, e_dst]), np.concatenate([e_dst, e_src])])
    edge_edge_index = jnp.asarray(eei, jnp.int32)

    enode = np.arange(num_interactions) + n_nodes
    ne_src = np.concatenate([users, items, enode, enode])
    ne_dst = np.concatenate([enode, enode, users, items])
    node_edge_index = jnp.asarray(np.stack([ne_src, ne_dst]), jnp.int32)

    adj_nn = build_norm_adj(edge_index, n_nodes)
    adj_ee = build_norm_adj(edge_edge_index, num_interactions)
    adj_ne = build_norm_adj(node_edge_index, n_nodes + num_interactions)

    # propagate (fused dual-adjacency tiled matmul kernels)
    gu_flat, gi_flat, gu_std, gi_std = propagate_embeddings(
        params, adj_nn, adj_ee, adj_ne, num_users, num_items, n_layers)

    # forward: batch of (user, pos-item) pairs, gather fused into the kernel
    batch = 8
    user_idx = jax.random.randint(k_u, (batch,), 0, num_users)
    item_idx = jax.random.randint(k_i, (batch,), 0, num_items)

    xui = pallas_forward(gu_flat, gi_flat, user_idx, item_idx)
    xui = jax.block_until_ready(xui)

    # reference check (plain JAX, same numerics, original concat-based structure)
    gu_ref, gi_ref, xui_ref = reference_propagate_and_forward(
        params, adj_nn, adj_ee, adj_ne, num_users, num_items, n_layers,
        user_idx, item_idx)

    np.testing.assert_allclose(np.asarray(gu_std.astype(jnp.float32)),
                               np.asarray(gu_ref.astype(jnp.float32)),
                               rtol=1e-2, atol=1e-3)
    np.testing.assert_allclose(np.asarray(gi_std.astype(jnp.float32)),
                               np.asarray(gi_ref.astype(jnp.float32)),
                               rtol=1e-2, atol=1e-3)
    np.testing.assert_allclose(np.asarray(xui), np.asarray(xui_ref),
                               rtol=1e-2, atol=1e-3)

    print("KERNEL_OK")
</pallas_src>

<mosaic_0001>
module attributes {stable_mosaic.version = 11 : i64} {
  func.func @kernel(%arg0: i32, %arg1: memref<16x128xbf16, #tpu.memory_space<vmem>>, %arg2: memref<128x128xbf16, #tpu.memory_space<vmem>>, %arg3: memref<1x128xf32, #tpu.memory_space<vmem>>, %arg4: memref<128x128xbf16, #tpu.memory_space<vmem>>, %arg5: memref<1x128xf32, #tpu.memory_space<vmem>>, %arg6: memref<16x128xbf16, #tpu.memory_space<vmem>>) attributes {dimension_semantics = [#tpu.dimension_semantics<parallel>], iteration_bounds = array<i64: 1>, scalar_prefetch = 0 : i64, scratch_operands = 0 : i64, tpu.core_type = #tpu.core_type<tc>, window_params = [{transform_indices = @transform_0, window_bounds = array<i64: 16, 128>}, {pipeline_mode = #tpu.pipeline_mode<synchronous>, transform_indices = @transform_1, window_bounds = array<i64: 128, 128>}, {pipeline_mode = #tpu.pipeline_mode<synchronous>, transform_indices = @transform_2, window_bounds = array<i64: 1, 128>}, {pipeline_mode = #tpu.pipeline_mode<synchronous>, transform_indices = @transform_3, window_bounds = array<i64: 128, 128>}, {pipeline_mode = #tpu.pipeline_mode<synchronous>, transform_indices = @transform_4, window_bounds = array<i64: 1, 128>}, {transform_indices = @transform_5, window_bounds = array<i64: 16, 128>}]} {
    %c0 = arith.constant 0 : index
    %c0_0 = arith.constant 0 : index
    %0 = vector.load %arg1[%c0, %c0_0] : memref<16x128xbf16, #tpu.memory_space<vmem>>, vector<16x128xbf16>
    %c0_1 = arith.constant 0 : index
    %c0_2 = arith.constant 0 : index
    %1 = vector.load %arg2[%c0_1, %c0_2] : memref<128x128xbf16, #tpu.memory_space<vmem>>, vector<128x128xbf16>
    %c0_3 = arith.constant 0 : index
    %c0_4 = arith.constant 0 : index
    %2 = vector.load %arg3[%c0_3, %c0_4] : memref<1x128xf32, #tpu.memory_space<vmem>>, vector<1x128xf32>
    %cst = arith.constant dense<0.000000e+00> : vector<16x128xf32>
    %3 = tpu.matmul %0, %1, %cst {dimension_numbers = #tpu.dot_dimension_numbers<[1], [0], [0], [1], [0, 0, 1, 1], [], []>} : vector<16x128xbf16>, vector<128x128xbf16>, vector<16x128xf32> -> vector<16x128xf32>
    %4 = vector.broadcast %2 : vector<1x128xf32> to vector<16x128xf32>
    %5 = arith.addf %3, %4 : vector<16x128xf32>
    %cst_5 = arith.constant 0.000000e+00 : f32
    %6 = vector.broadcast %cst_5 : f32 to vector<16x128xf32>
    %7 = arith.maximumf %5, %6 : vector<16x128xf32>
    %8 = arith.truncf %7 : vector<16x128xf32> to vector<16x128xbf16>
    %c0_6 = arith.constant 0 : index
    %c0_7 = arith.constant 0 : index
    %9 = vector.load %arg4[%c0_6, %c0_7] : memref<128x128xbf16, #tpu.memory_space<vmem>>, vector<128x128xbf16>
    %c0_8 = arith.constant 0 : index
    %c0_9 = arith.constant 0 : index
    %10 = vector.load %arg5[%c0_8, %c0_9] : memref<1x128xf32, #tpu.memory_space<vmem>>, vector<1x128xf32>
    %cst_10 = arith.constant dense<0.000000e+00> : vector<16x128xf32>
    %11 = tpu.matmul %8, %9, %cst_10 {dimension_numbers = #tpu.dot_dimension_numbers<[1], [0], [0], [1], [0, 0, 1, 1], [], []>} : vector<16x128xbf16>, vector<128x128xbf16>, vector<16x128xf32> -> vector<16x128xf32>
    %12 = vector.broadcast %10 : vector<1x128xf32> to vector<16x128xf32>
    %13 = arith.addf %11, %12 : vector<16x128xf32>
    %cst_11 = arith.constant 0.000000e+00 : f32
    %14 = vector.broadcast %cst_11 : f32 to vector<16x128xf32>
    %15 = arith.maximumf %13, %14 : vector<16x128xf32>
    %16 = arith.truncf %15 : vector<16x128xf32> to vector<16x128xbf16>
    %c0_12 = arith.constant 0 : index
    %c0_13 = arith.constant 0 : index
    %17 = vector.load %arg6[%c0_12, %c0_13] : memref<16x128xbf16, #tpu.memory_space<vmem>>, vector<16x128xbf16>
    tpu.vector_store %arg6[%c0_12, %c0_13], %16 {strides = array<i32>} : memref<16x128xbf16, #tpu.memory_space<vmem>>, vector<16x128xbf16>,
    return
  }
  func.func @transform_0(%arg0: i32) -> (i32, i32) {
    %c0_i32 = arith.constant 0 : i32
    %c0_i32_0 = arith.constant 0 : i32
    return %arg0, %c0_i32 : i32, i32
  }
  func.func @transform_1(%arg0: i32) -> (i32, i32) {
    %c0_i32 = arith.constant 0 : i32
    %c0_i32_0 = arith.constant 0 : i32
    %c0_i32_1 = arith.constant 0 : i32
    return %c0_i32, %c0_i32_0 : i32, i32
  }
  func.func @transform_2(%arg0: i32) -> (i32, i32) {
    %c0_i32 = arith.constant 0 : i32
    %c0_i32_0 = arith.constant 0 : i32
    %c0_i32_1 = arith.constant 0 : i32
    return %c0_i32, %c0_i32_0 : i32, i32
  }
  func.func @transform_3(%arg0: i32) -> (i32, i32) {
    %c0_i32 = arith.constant 0 : i32
    %c0_i32_0 = arith.constant 0 : i32
    %c0_i32_1 = arith.constant 0 : i32
    return %c0_i32, %c0_i32_0 : i32, i32
  }
  func.func @transform_4(%arg0: i32) -> (i32, i32) {
    %c0_i32 = arith.constant 0 : i32
    %c0_i32_0 = arith.constant 0 : i32
    %c0_i32_1 = arith.constant 0 : i32
    return %c0_i32, %c0_i32_0 : i32, i32
  }
  func.func @transform_5(%arg0: i32) -> (i32, i32) {
    %c0_i32 = arith.constant 0 : i32
    %c0_i32_0 = arith.constant 0 : i32
    return %arg0, %c0_i32 : i32, i32
  }
}

</mosaic_0001>

<bundles_post_ra>
// kernel: tpu_custom_call.1
= control target key start
LH: loop header
LB: loop body
LE: loop exit
PB: predicated region body
PF: predicated region fallthrough
CT: control target
= control target key end

     0   :  { %10 = vsyncpa [#allocation3], 0  ;;  %s644_s0 = inlined_call_operand.hbm [shape: bf16[16,128], index: 0, kind: input, shape index: {}]   ;;  %s645_s1 = inlined_call_operand.hbm [shape: bf16[128,128], index: 1, kind: input, shape index: {}]   ;;  %s646_s2 = inlined_call_operand.vmem [shape: f32[1,128], index: 2, kind: input, shape index: {}]   ;;  %s647_s3 = inlined_call_operand.hbm [shape: bf16[128,128], index: 3, kind: input, shape index: {}]   ;;  %s648_s4 = inlined_call_operand.vmem [shape: f32[1,128], index: 4, kind: input, shape index: {}]   ;;  %s649_s5 = inlined_call_operand.hbm [shape: bf16[16,128], index: 5, kind: output, shape index: {}]  }
   0x1   :  { %11 = vsyncpa [#allocation6], 0 }
   0x2   :  { %12 = vsyncpa [#allocation4], 0  ;;  %s533_s18 = smov [#allocation5]   ;;  %s534_s20 = smov [#allocation2]  }
   0x3   :  { %s30_s19 = sshll.u32 %s533_s18, 4  ;;  %s18_s21 = sshll.u32 %s534_s20, 4  ;;  %s31_s19 = int_to_ptr.vmem [resolvable:$true] %s30_s19  ;;  %s571_s21 = int_to_ptr.vmem [resolvable:$true] %s18_s21 }
   0x4   :  { %s439_s24 = scalar_lea.hbm %s645_s1, 1024 }
   0x5   :  { %p440_p0 = scmp.ne.s32.totalorder %s645_s1, %s439_s24  ;;  %p443_p1 = scmp.lt.u32.totalorder %s439_s24, %s645_s1 }
   0x7   :  { %p445_p2 = pnand %p443_p1, %p440_p0 }
   0x9   :  { %448 = shalt.err (!%p445_p2)
}
   0xa   :  { %s449_s29 = scalar_lea.vmem %s31_s19, 1024  ;;  %p454_p4 = scmp.lt.s32.totalorder %s31_s19, %s31_s19 }
   0xb   :  { %p450_p3 = scmp.ne.s32.totalorder %s31_s19, %s449_s29  ;;  %p455_p5 = scmp.lt.s32.totalorder %s449_s29, %s449_s29 }
   0xd   :  { %p456_p6 = por %p455_p5, %p454_p4 }
   0xf   :  { %p457_p7 = pnand %p456_p6, %p450_p3 }
  0x11   :  { %460 = shalt.err (!%p457_p7)
}
  0x12   :  { %s535_s30 = smov 64   ;;  %s536_s6 = smov 4  }
  0x13   :  { %36 = dma.hbm_to_vmem [thread:$0]  %s645_s1, 1024, %s31_s19, [#allocation6], %s535_s30, %s535_s30, %s536_s6  }
  0x14   :  { %s461_s11 = scalar_lea.hbm %s644_s0, 128 }
  0x15   :  { %p462_p8 = scmp.ne.s32.totalorder %s644_s0, %s461_s11  ;;  %p465_p9 = scmp.lt.u32.totalorder %s461_s11, %s644_s0 }
  0x17   :  { %p467_p10 = pnand %p465_p9, %p462_p8 }
  0x19   :  { %470 = shalt.err (!%p467_p10)
}
  0x1a   :  { %s471_s16 = scalar_lea.vmem %s571_s21, 128  ;;  %p476_p12 = scmp.lt.s32.totalorder %s571_s21, %s571_s21 }
  0x1b   :  { %p472_p11 = scmp.ne.s32.totalorder %s571_s21, %s471_s16  ;;  %p477_p13 = scmp.lt.s32.totalorder %s471_s16, %s471_s16 }
  0x1d   :  { %p478_p0 = por %p477_p13, %p476_p12 }
  0x1f   :  { %p479_p1 = pnand %p478_p0, %p472_p11 }
  0x21   :  { %482 = shalt.err (!%p479_p1)
}
  0x22   :  { %24 = dma.hbm_to_vmem [thread:$0]  %s644_s0, 128, %s571_s21, [#allocation3], %s535_s30, %s535_s30, %s536_s6  }
  0x23   :  { %s537_s18 = smov [#allocation7]   ;;  %s483_s23 = scalar_lea.hbm %s647_s3, 1024 }
  0x24   :  { %s44_s19 = sshll.u32 %s537_s18, 4  ;;  %p484_p2 = scmp.ne.s32.totalorder %s647_s3, %s483_s23  ;;  %s45_s19 = int_to_ptr.vmem [resolvable:$true] %s44_s19 }
  0x25   :  { %p487_p3 = scmp.lt.u32.totalorder %s483_s23, %s647_s3 }
  0x27   :  { %p489_p4 = pnand %p487_p3, %p484_p2 }
  0x29   :  { %492 = shalt.err (!%p489_p4)
}
  0x2a   :  { %s493_s28 = scalar_lea.vmem %s45_s19, 1024  ;;  %p498_p6 = scmp.lt.s32.totalorder %s45_s19, %s45_s19 }
  0x2b   :  { %p494_p5 = scmp.ne.s32.totalorder %s45_s19, %s493_s28  ;;  %p499_p7 = scmp.lt.s32.totalorder %s493_s28, %s493_s28 }
  0x2d   :  { %p500_p8 = por %p499_p7, %p498_p6 }
  0x2f   :  { %p501_p9 = pnand %p500_p8, %p494_p5 }
  0x31   :  { %504 = shalt.err (!%p501_p9)
}
  0x32   :  { %50 = dma.hbm_to_vmem [thread:$0]  %s647_s3, 1024, %s45_s19, [#allocation6], %s535_s30, %s535_s30, %s536_s6  }
  0x33   :  { %527 = dma.done.wait [#allocation3], 128  }
  0x34   :  { %528 = vsyncadd [#allocation3], 4294967168 }
  0x35   :  { %529 = dma.done.wait [#allocation6], 2048  }
  0x36   :  { %530 = vsyncadd [#allocation6], 4294965248  ;;  %v538_v0 = vmov 0.0   ;;  %vm539_vm0 = vmmov 0   ;;  %v422_v1 = vld [vmem:[#allocation5] sm:$0xff]   ;;  %v423_v2 = vld [vmem:[#allocation5 + $0x8] sm:$0xff]  }
  0x37   :  { %374 = vmatprep.subr.bf16.mxu0 %v538_v0  ;;  %390 = vmatprep.mubr.msk.bf16.mxu0 %vm539_vm0, %v538_v0  ;;  %v424_v3 = vld [vmem:[#allocation5 + $0x10] sm:$0xff]   ;;  %v431_v4 = vld [vmem:[#allocation7] sm:$0xff]   ;;  %v425_v5 = vld [vmem:[#allocation5 + $0x18] sm:$0xff]  }
  0x38   :  { %394 = vmatprep.subr.bf16.mxu1 %v538_v0  ;;  %410 = vmatprep.mubr.msk.bf16.mxu1 %vm539_vm0, %v538_v0  ;;  %v432_v6 = vld [vmem:[#allocation7 + $0x8] sm:$0xff]   ;;  %v426_v7 = vld [vmem:[#allocation5 + $0x20] sm:$0xff]   ;;  %v433_v8 = vld [vmem:[#allocation7 + $0x10] sm:$0xff]  }
  0x39   :  { %375 = vmatpush3.bf16.msra.mxu0 %v422_v1  ;;  %395 = vmatpush3.bf16.msra.mxu1 %v431_v4  ;;  %v427_v9 = vld [vmem:[#allocation5 + $0x28] sm:$0xff]   ;;  %v434_v10 = vld [vmem:[#allocation7 + $0x18] sm:$0xff]   ;;  %v428_v11 = vld [vmem:[#allocation5 + $0x30] sm:$0xff]  }
  0x3a   :  { %376 = vmatprep.subr.bf16.mxu0 %v538_v0  ;;  %396 = vmatprep.subr.bf16.mxu1 %v538_v0  ;;  %v435_v12 = vld [vmem:[#allocation7 + $0x20] sm:$0xff]   ;;  %v429_v13 = vld [vmem:[#allocation5 + $0x38] sm:$0xff]   ;;  %v436_v14 = vld [vmem:[#allocation7 + $0x28] sm:$0xff]  }
  0x3b   :  { %v430_v15 = vld [vmem:[#allocation2] sm:$0xff]   ;;  %v437_v16 = vld [vmem:[#allocation7 + $0x30] sm:$0xff]  }
  0x3c   :  { %v438_v17 = vld [vmem:[#allocation7 + $0x38] sm:$0xff]  }
  0x3d   :  { %377 = vmatpush3.bf16.msra.mxu0 %v423_v2  ;;  %397 = vmatpush3.bf16.msra.mxu1 %v432_v6  ;;  %v328_v18 = vld [vmem:[%s646_s2] ss:$0 sm:$0xff]  ;;  %s540_s2 = smov [#allocation8]  }
  0x3e   :  { %378 = vmatprep.subr.bf16.mxu0 %v538_v0  ;;  %398 = vmatprep.subr.bf16.mxu1 %v538_v0  ;;  %v338_v28 = vld [vmem:[%s648_s4] ss:$0 sm:$0xff]  ;;  %s315_s9 = sshll.u32 %s540_s2, 4  ;;  %s316_s9 = int_to_ptr.vmem [resolvable:$true] %s315_s9 }
  0x3f   :  { %s505_s10 = scalar_lea.vmem %s316_s9, 128  ;;  %p510_p11 = scmp.lt.s32.totalorder %s316_s9, %s316_s9 }
  0x40   :  { %p506_p10 = scmp.ne.s32.totalorder %s316_s9, %s505_s10  ;;  %p511_p12 = scmp.lt.s32.totalorder %s505_s10, %s505_s10 }
  0x41   :  { %379 = vmatpush3.bf16.msra.mxu0 %v424_v3  ;;  %399 = vmatpush3.bf16.msra.mxu1 %v433_v8 }
  0x42   :  { %380 = vmatprep.subr.bf16.mxu0 %v538_v0  ;;  %400 = vmatprep.subr.bf16.mxu1 %v538_v0  ;;  %p512_p13 = por %p511_p12, %p510_p11 }
  0x44   :  { %p513_p0 = pnand %p512_p13, %p506_p10 }
  0x45   :  { %381 = vmatpush3.bf16.msra.mxu0 %v425_v5  ;;  %401 = vmatpush3.bf16.msra.mxu1 %v434_v10 }
  0x46   :  { %382 = vmatprep.subr.bf16.mxu0 %v538_v0  ;;  %402 = vmatprep.subr.bf16.mxu1 %v538_v0 }
  0x49   :  { %383 = vmatpush3.bf16.msra.mxu0 %v426_v7  ;;  %403 = vmatpush3.bf16.msra.mxu1 %v435_v12 }
  0x4a   :  { %384 = vmatprep.subr.bf16.mxu0 %v538_v0  ;;  %404 = vmatprep.subr.bf16.mxu1 %v538_v0 }
  0x4d   :  { %385 = vmatpush3.bf16.msra.mxu0 %v427_v9  ;;  %405 = vmatpush3.bf16.msra.mxu1 %v436_v14 }
  0x4e   :  { %386 = vmatprep.subr.bf16.mxu0 %v538_v0  ;;  %406 = vmatprep.subr.bf16.mxu1 %v538_v0 }
  0x51   :  { %387 = vmatpush3.bf16.msra.mxu0 %v428_v11  ;;  %407 = vmatpush3.bf16.msra.mxu1 %v437_v16 }
  0x52   :  { %388 = vmatprep.subr.bf16.mxu0 %v538_v0  ;;  %408 = vmatprep.subr.bf16.mxu1 %v538_v0 }
  0x55   :  { %389 = vmatpush3.bf16.msra.mxu0 %v429_v13  ;;  %409 = vmatpush3.bf16.msra.mxu1 %v438_v17 }
  0x58   :  { %391 = vmatmul.mubr.bf16.vlgmr.msra.gmra.mrb[0].mxu0 %v430_v15 }
 0x12b   :  { %v176_v19 = vpop.f32.mrb[0].mxu0 }
 0x12c   :  { %v177_v20 = vadd.f32 %v328_v18, %v176_v19  ;;  %v392_v21 = vpop.f32.mrb[1].mxu0 }
 0x12d   :  { %v179_v22 = vpop.f32.mrb[2].mxu0 }
 0x12e   :  { %v180_v23 = vadd.f32 %v328_v18, %v179_v22  ;;  %v393_v24 = vpop.f32.mrb[3].mxu0  ;;  %v183_v25 = vmax.f32 %v177_v20, 0.0 }
 0x130   :  { %v184_v26 = vmax.f32 %v180_v23, 0.0 }
 0x132   :  { %v185_v27 = vpack.c.bf16 %v184_v26, %v183_v25 }
 0x134   :  { %411 = vmatmul.mubr.bf16.vlgmr.msra.gmra.mrb[0].mxu1 %v185_v27 }
 0x207   :  { %v291_v29 = vpop.f32.mrb[0].mxu1 }
 0x208   :  { %v292_v30 = vadd.f32 %v338_v28, %v291_v29  ;;  %v412_v31 = vpop.f32.mrb[1].mxu1 }
 0x209   :  { %v294_v32 = vpop.f32.mrb[2].mxu1 }
 0x20a   :  { %v295_v33 = vadd.f32 %v338_v28, %v294_v32  ;;  %v413_v34 = vpop.f32.mrb[3].mxu1  ;;  %v298_v35 = vmax.f32 %v292_v30, 0.0 }
 0x20c   :  { %v299_v36 = vmax.f32 %v295_v33, 0.0 }
 0x20e   :  { %v354_v37 = vpack.c.bf16 %v299_v36, %v298_v35 }
 0x210   :  { %355 = vst [vmem:[#allocation8] sm:$0xff] %v354_v37  }
 0x211   :  { %516 = shalt.err (!%p513_p0)
}
 0x212   :  { %s517_s12 = scalar_lea.hbm %s649_s5, 128 }
 0x213   :  { %p518_p1 = scmp.ne.s32.totalorder %s649_s5, %s517_s12  ;;  %p521_p2 = scmp.lt.u32.totalorder %s517_s12, %s649_s5 }
 0x215   :  { %p523_p3 = pnand %p521_p2, %p518_p1 }
 0x217   :  { %526 = shalt.err (!%p523_p3)
}
 0x218   :  { %321 = dma.vmem_to_hbm [thread:$0]  %s316_s9, 128, %s649_s5, [#allocation4], %s535_s30, %s535_s30, %s536_s6  }
 0x219   :  { %531 = dma.done.wait [#allocation4], 128  }
 0x21a   :  { %532 = vsyncadd [#allocation4], 4294967168 }
 0x21b   :  { %325 = vsyncpa [#allocation3], 1 }
 0x21c   :  { %326 = vsyncpa [#allocation6], 1 }
 0x21d   :  { %327 = vsyncpa [#allocation4], 1 }

</bundles_post_ra>
